<compile_context>
chip_gen: v7x
topology: tpu7x:2x2x1
jax: 0.10.0
libtpu: 0.0.40
codegen_flags: <defaults>
</compile_context>

<pallas_src>
import jax
import jax.numpy as jnp
from jax.experimental import pallas as pl
from jax.experimental.pallas import tpu as pltpu

OUT_PAD = 128   # lane-dense padded width of the final (…, 2) projection
NSEM = 16       # DMA semaphores used round-robin by the row gather


def _round_up(x: int, m: int) -> int:
    return (x + m - 1) // m * m


def _make_kernel(total_b: int, seq: int, bt: int, hidden: int):
    """total_b = padded batch; one grid step handles a tile of bt batch rows, both towers."""
    tok_per_tower = bt * seq            # gathered rows per tower per tile
    n_tok = 2 * tok_per_tower           # gather-buffer rows (tower-1 block then tower-2)
    inv_s = 1.0 / seq

    def kernel(ids_ref,                                     # SMEM (2*total_b*seq,) int32
               tw1_hbm,                                     # HBM  (V, H) f32  (= table @ w1)
               b1_ref, w2_ref, b2_ref,                      # VMEM biases (f32) / weights (bf16)
               wp1a_ref, wp1b_ref, bp1_ref, wp2_ref, bp2_ref,
               out_ref,                                     # VMEM (bt, OUT_PAD) f32
               emb_ref, sems):                              # gather scratch + DMA sems
        base = pl.program_id(0) * tok_per_tower

        # ---- data-dependent row gather: emb_ref[j, :] <- tw1[ids[...], :]  (manual DMA) ----
        for tower in range(2):                              # static: tower-1 ids, then tower-2
            ids_base = tower * (total_b * seq) + base       # traced scalar offset into SMEM ids
            buf_base = tower * tok_per_tower                # python int

            @pl.loop(0, tok_per_tower)
            def _start(t, ids_base=ids_base, buf_base=buf_base):
                row = ids_ref[ids_base + t]
                pltpu.make_async_copy(
                    tw1_hbm.at[pl.ds(row, 1), :],
                    emb_ref.at[pl.ds(buf_base + t, 1), :],
                    sems.at[(buf_base + t) & (NSEM - 1)],
                ).start()

        @pl.loop(0, n_tok)
        def _wait(j):
            pltpu.make_async_copy(
                tw1_hbm.at[pl.ds(0, 1), :],                 # dummy src index; same shape/sem
                emb_ref.at[pl.ds(j, 1), :],
                sems.at[j & (NSEM - 1)],
            ).wait()

        # ---- encode layer (first Linear already folded into the gathered rows) ----
        h = jnp.maximum(emb_ref[...] + b1_ref[...], 0.0)            # (2*bt*S, H) f32, ReLU
        hm = h.reshape(2 * bt, seq, hidden).sum(axis=1) * inv_s     # seq mean -> (2*bt, H)
        m = jnp.dot(hm.astype(jnp.bfloat16), w2_ref[...],
                    preferred_element_type=jnp.float32) + b2_ref[...]   # (2*bt, 2H) f32

        # ---- predict layer (concat replaced by split wp1) ----
        m1 = m[:bt].astype(jnp.bfloat16)
        m2 = m[bt:].astype(jnp.bfloat16)
        p = (jnp.dot(m1, wp1a_ref[...], preferred_element_type=jnp.float32)
             + jnp.dot(m2, wp1b_ref[...], preferred_element_type=jnp.float32)
             + bp1_ref[...])
        p = jnp.maximum(p, 0.0).astype(jnp.bfloat16)

        # final Linear(2H, 2), zero-padded to 128 output lanes (unmasked lane-dense store)
        out_ref[...] = (jnp.dot(p, wp2_ref[...],
                                preferred_element_type=jnp.float32) + bp2_ref[...])

    return kernel


@jax.jit
def base_classification_forward(x1_ids, x2_ids, params):
    B, S = x1_ids.shape
    table = params['embedding']
    V, H = table.shape

    # ---- weight prep (wrapper-side, cheap, once per call) ----
    tw1 = jnp.dot(table, params['w1'])                    # (V, H) f32, w1 folded into the table
    b1 = params['b1'].reshape(1, -1)
    w2 = params['w2'].astype(jnp.bfloat16)
    b2 = params['b2'].reshape(1, -1)
    wp1a = params['wp1'][:2 * H].astype(jnp.bfloat16)     # applied to pooled tower-1
    wp1b = params['wp1'][2 * H:].astype(jnp.bfloat16)     # applied to pooled tower-2
    bp1 = params['bp1'].reshape(1, -1)
    wp2p = jnp.zeros((2 * H, OUT_PAD), jnp.bfloat16).at[:, :2].set(
        params['wp2'].astype(jnp.bfloat16))
    bp2p = jnp.zeros((1, OUT_PAD), jnp.float32).at[0, :2].set(params['bp2'])

    # ---- batch tiling: multiple of 8, VMEM-budget capped; pad B to a multiple of bt ----
    # gather scratch (2*bt*S, H) f32 kept under ~4 MiB
    bt_budget = max(8, ((4 << 20) // (8 * S * H)) // 8 * 8)
    bt = int(min(64, bt_budget, _round_up(B, 8)))
    # TODO(synk): at production batch sizes prefer bt <= B_pad // 2 so the "parallel"
    #             batch axis actually shards across both v7x TensorCores.
    B_pad = _round_up(B, bt)
    grid = (B_pad // bt,)

    # ids stacked as [tower-1 tokens | tower-2 tokens], each (B_pad*S,) row-major (b, s)
    x1p = jnp.zeros((B_pad, S), jnp.int32).at[:B, :].set(x1_ids.astype(jnp.int32))
    x2p = jnp.zeros((B_pad, S), jnp.int32).at[:B, :].set(x2_ids.astype(jnp.int32))
    ids_all = jnp.concatenate([x1p.reshape(-1), x2p.reshape(-1)])     # (2*B_pad*S,)

    def full_spec(a):
        return pl.BlockSpec(a.shape, lambda i, ids: (0, 0))

    # ---- advisory cost / VMEM budget ----
    flops = int(2 * (2 * B_pad) * H * (2 * H)                 # w2 matmul
                + 2 * 2 * B_pad * (2 * H) * (2 * H)           # wp1a + wp1b
                + 2 * B_pad * (2 * H) * OUT_PAD)              # wp2 (padded)
    bytes_accessed = int(2 * B_pad * S * 4                    # prefetched ids
                         + 2 * B_pad * S * H * 4              # gathered tw1 rows from HBM
                         + (w2.size + wp1a.size + wp1b.size + wp2p.size) * 2
                         + (b1.size + b2.size + bp1.size + bp2p.size) * 4
                         + B_pad * OUT_PAD * 4)
    cost = pl.CostEstimate(flops=flops, transcendentals=0, bytes_accessed=bytes_accessed)

    resident_bytes = (2 * bt * S * H * 4                              # gather scratch
                      + 2 * ((w2.size + wp1a.size + wp1b.size + wp2p.size) * 2
                             + (b1.size + b2.size + bp1.size + bp2p.size) * 4)
                      + 2 * bt * OUT_PAD * 4)                         # output tile
    vmem_limit = int(min(64 << 20, max(16 << 20, 2 * resident_bytes)))

    out = pl.pallas_call(
        _make_kernel(B_pad, S, bt, H),
        out_shape=jax.ShapeDtypeStruct((B_pad, OUT_PAD), jnp.float32),
        grid_spec=pltpu.PrefetchScalarGridSpec(
            num_scalar_prefetch=1,                     # ids -> SMEM, drive the DMA gather
            grid=grid,
            in_specs=[
                pl.BlockSpec(memory_space=pl.ANY),     # tw1 stays in HBM; rows DMA-gathered
                full_spec(b1), full_spec(w2), full_spec(b2),
                full_spec(wp1a), full_spec(wp1b), full_spec(bp1),
                full_spec(wp2p), full_spec(bp2p),
            ],
            out_specs=pl.BlockSpec((bt, OUT_PAD), lambda i, ids: (i, 0)),
            scratch_shapes=[
                pltpu.VMEM((2 * bt * S, H), jnp.float32),   # gathered (tower1 | tower2) rows
                pltpu.SemaphoreType.DMA((NSEM,)),
            ],
        ),
        compiler_params=pltpu.CompilerParams(
            dimension_semantics=("parallel",),
            vmem_limit_bytes=vmem_limit),
        cost_estimate=cost,
    )(ids_all, tw1, b1, w2, b2, wp1a, wp1b, bp1, wp2p, bp2p)

    return out[:B, :2]


def init_params(key, vocab_size, hidden_dim):
    ks = jax.random.split(key, 9)
    H = hidden_dim
    return {
        'embedding': jax.random.normal(ks[0], (vocab_size, H), jnp.float32),
        # encode_layer: Linear(H, H), Linear(H, 2H)
        'w1': jax.random.normal(ks[1], (H, H), jnp.float32) * 0.1,
        'b1': jax.random.normal(ks[2], (H,), jnp.float32) * 0.1,
        'w2': jax.random.normal(ks[3], (H, 2 * H), jnp.float32) * 0.1,
        'b2': jax.random.normal(ks[4], (2 * H,), jnp.float32) * 0.1,
        # predict_layer: Linear(4H, 2H), Linear(2H, 2)
        'wp1': jax.random.normal(ks[5], (4 * H, 2 * H), jnp.float32) * 0.1,
        'bp1': jax.random.normal(ks[6], (2 * H,), jnp.float32) * 0.1,
        'wp2': jax.random.normal(ks[7], (2 * H, 2), jnp.float32) * 0.1,
        'bp2': jax.random.normal(ks[8], (2,), jnp.float32) * 0.1,
    }


def reference_forward(x1_ids, x2_ids, params):
    """Pure-JAX f32 reference mirroring the PyTorch forward (eval mode)."""
    def enc(ids):
        e = jnp.take(params['embedding'], ids, axis=0)
        h = jnp.maximum(e @ params['w1'] + params['b1'], 0.0)
        e2 = h @ params['w2'] + params['b2']
        return e2.mean(axis=1)
    cat = jnp.concatenate([enc(x1_ids), enc(x2_ids)], axis=-1)
    h = jnp.maximum(cat @ params['wp1'] + params['bp1'], 0.0)
    return h @ params['wp2'] + params['bp2']


if __name__ == "__main__":
    vocab_size, hidden_dim = 32, 32
    batch, seq = 2, 8

    key = jax.random.PRNGKey(0)
    k_param, k_x1, k_x2 = jax.random.split(key, 3)
    params = init_params(k_param, vocab_size, hidden_dim)

    x1 = jax.random.randint(k_x1, (batch, seq), 0, vocab_size, dtype=jnp.int32)
    x2 = jax.random.randint(k_x2, (batch, seq), 0, vocab_size, dtype=jnp.int32)

    out = base_classification_forward(x1, x2, params)
    out = jax.block_until_ready(out)

    ref = reference_forward(x1, x2, params)
    assert out.shape == (batch, 2), out.shape
    # bf16 MXU operands (f32 accumulate) -> tolerance relaxed vs the pure-f32 reference
    assert jnp.allclose(out, ref, atol=5e-2, rtol=5e-2), (out, ref)

    print("KERNEL_OK")
</pallas_src>

<mosaic_0001>
module attributes {stable_mosaic.version = 11 : i64} {
  func.func @kernel(%arg0: i32, %arg1: memref<128xi32, #tpu.memory_space<smem>>, %arg2: memref<32x32xf32, #tpu.memory_space<any>>, %arg3: memref<1x32xf32, #tpu.memory_space<vmem>>, %arg4: memref<32x64xbf16, #tpu.memory_space<vmem>>, %arg5: memref<1x64xf32, #tpu.memory_space<vmem>>, %arg6: memref<64x64xbf16, #tpu.memory_space<vmem>>, %arg7: memref<64x64xbf16, #tpu.memory_space<vmem>>, %arg8: memref<1x64xf32, #tpu.memory_space<vmem>>, %arg9: memref<64x128xbf16, #tpu.memory_space<vmem>>, %arg10: memref<1x128xf32, #tpu.memory_space<vmem>>, %arg11: memref<8x128xf32, #tpu.memory_space<vmem>>, %arg12: memref<128x32xf32, #tpu.memory_space<vmem>>, %arg13: memref<16x!tpu.dma_semaphore, #tpu.memory_space<semaphore_mem>>) attributes {dimension_semantics = [#tpu.dimension_semantics<parallel>], iteration_bounds = array<i64: 1>, scalar_prefetch = 1 : i64, scratch_operands = 2 : i64, tpu.core_type = #tpu.core_type<tc>, window_params = [{}, {pipeline_mode = #tpu.pipeline_mode<synchronous>, transform_indices = @transform_1, window_bounds = array<i64: 1, 32>}, {pipeline_mode = #tpu.pipeline_mode<synchronous>, transform_indices = @transform_2, window_bounds = array<i64: 32, 64>}, {pipeline_mode = #tpu.pipeline_mode<synchronous>, transform_indices = @transform_3, window_bounds = array<i64: 1, 64>}, {pipeline_mode = #tpu.pipeline_mode<synchronous>, transform_indices = @transform_4, window_bounds = array<i64: 64, 64>}, {pipeline_mode = #tpu.pipeline_mode<synchronous>, transform_indices = @transform_5, window_bounds = array<i64: 64, 64>}, {pipeline_mode = #tpu.pipeline_mode<synchronous>, transform_indices = @transform_6, window_bounds = array<i64: 1, 64>}, {pipeline_mode = #tpu.pipeline_mode<synchronous>, transform_indices = @transform_7, window_bounds = array<i64: 64, 128>}, {pipeline_mode = #tpu.pipeline_mode<synchronous>, transform_indices = @transform_8, window_bounds = array<i64: 1, 128>}, {transform_indices = @transform_9, window_bounds = array<i64: 8, 128>}]} {
    %c64_i32 = arith.constant 64 : i32
    %0 = arith.muli %arg0, %c64_i32 : i32
    %c0_i32 = arith.constant 0 : i32
    %1 = arith.addi %c0_i32, %0 : i32
    %c0_i32_0 = arith.constant 0 : i32
    %c64_i32_1 = arith.constant 64 : i32
    %2 = arith.addi %c0_i32_0, %c64_i32_1 : i32
    %c1_i32 = arith.constant 1 : i32
    scf.for %arg14 = %c0_i32_0 to %2 step %c1_i32  : i32 {
      %c1_i32_37 = arith.constant 1 : i32
      %43 = arith.muli %arg14, %c1_i32_37 : i32
      %c0_i32_38 = arith.constant 0 : i32
      %44 = arith.addi %c0_i32_38, %43 : i32
      %45 = arith.addi %1, %44 : i32
      %46 = arith.index_cast %45 : i32 to index
      %47 = memref.load %arg1[%46] : memref<128xi32, #tpu.memory_space<smem>>
      %c0_i32_39 = arith.constant 0 : i32
      %48 = arith.addi %c0_i32_39, %44 : i32
      %c0_i32_40 = arith.constant 0 : i32
      %49 = arith.addi %c0_i32_40, %44 : i32
      %c15_i32 = arith.constant 15 : i32
      %50 = arith.andi %49, %c15_i32 : i32
      %c0_i32_41 = arith.constant 0 : i32
      %51 = tpu.memref_slice %arg2[%47, %c0_i32_41] : memref<32x32xf32, #tpu.memory_space<any>> -> memref<1x32xf32, #tpu.memory_space<any>>
      %c0_i32_42 = arith.constant 0 : i32
      %52 = tpu.memref_slice %arg12[%48, %c0_i32_42] : memref<128x32xf32, #tpu.memory_space<vmem>> -> memref<1x32xf32, #tpu.memory_space<vmem>>
      %53 = tpu.memref_slice %arg13[%50] : memref<16x!tpu.dma_semaphore, #tpu.memory_space<semaphore_mem>> -> memref<1x!tpu.dma_semaphore, #tpu.memory_space<semaphore_mem>>
      %54 = tpu.memref_squeeze %53 : memref<1x!tpu.dma_semaphore, #tpu.memory_space<semaphore_mem>> -> memref<!tpu.dma_semaphore, #tpu.memory_space<semaphore_mem>>
      tpu.enqueue_dma source(%51 : memref<1x32xf32, #tpu.memory_space<any>>) target(%52 : memref<1x32xf32, #tpu.memory_space<vmem>>) target_semaphore(%54 : memref<!tpu.dma_semaphore, #tpu.memory_space<semaphore_mem>>)
    }
    %c64_i32_2 = arith.constant 64 : i32
    %c64_i32_3 = arith.constant 64 : i32
    %3 = arith.addi %c64_i32_3, %0 : i32
    %c0_i32_4 = arith.constant 0 : i32
    %c64_i32_5 = arith.constant 64 : i32
    %4 = arith.addi %c0_i32_4, %c64_i32_5 : i32
    %c1_i32_6 = arith.constant 1 : i32
    scf.for %arg14 = %c0_i32_4 to %4 step %c1_i32_6  : i32 {
      %c1_i32_37 = arith.constant 1 : i32
      %43 = arith.muli %arg14, %c1_i32_37 : i32
      %c0_i32_38 = arith.constant 0 : i32
      %44 = arith.addi %c0_i32_38, %43 : i32
      %45 = arith.addi %3, %44 : i32
      %46 = arith.index_cast %45 : i32 to index
      %47 = memref.load %arg1[%46] : memref<128xi32, #tpu.memory_space<smem>>
      %c64_i32_39 = arith.constant 64 : i32
      %48 = arith.addi %c64_i32_39, %44 : i32
      %c64_i32_40 = arith.constant 64 : i32
      %49 = arith.addi %c64_i32_40, %44 : i32
      %c15_i32 = arith.constant 15 : i32
      %50 = arith.andi %49, %c15_i32 : i32
      %c0_i32_41 = arith.constant 0 : i32
      %51 = tpu.memref_slice %arg2[%47, %c0_i32_41] : memref<32x32xf32, #tpu.memory_space<any>> -> memref<1x32xf32, #tpu.memory_space<any>>
      %c0_i32_42 = arith.constant 0 : i32
      %52 = tpu.memref_slice %arg12[%48, %c0_i32_42] : memref<128x32xf32, #tpu.memory_space<vmem>> -> memref<1x32xf32, #tpu.memory_space<vmem>>
      %53 = tpu.memref_slice %arg13[%50] : memref<16x!tpu.dma_semaphore, #tpu.memory_space<semaphore_mem>> -> memref<1x!tpu.dma_semaphore, #tpu.memory_space<semaphore_mem>>
      %54 = tpu.memref_squeeze %53 : memref<1x!tpu.dma_semaphore, #tpu.memory_space<semaphore_mem>> -> memref<!tpu.dma_semaphore, #tpu.memory_space<semaphore_mem>>
      tpu.enqueue_dma source(%51 : memref<1x32xf32, #tpu.memory_space<any>>) target(%52 : memref<1x32xf32, #tpu.memory_space<vmem>>) target_semaphore(%54 : memref<!tpu.dma_semaphore, #tpu.memory_space<semaphore_mem>>)
    }
    %c64_i32_7 = arith.constant 64 : i32
    %c0_i32_8 = arith.constant 0 : i32
    %c128_i32 = arith.constant 128 : i32
    %5 = arith.addi %c0_i32_8, %c128_i32 : i32
    %c1_i32_9 = arith.constant 1 : i32
    scf.for %arg14 = %c0_i32_8 to %5 step %c1_i32_9  : i32 {
      %c1_i32_37 = arith.constant 1 : i32
      %43 = arith.muli %arg14, %c1_i32_37 : i32
      %c0_i32_38 = arith.constant 0 : i32
      %44 = arith.addi %c0_i32_38, %43 : i32
      %c15_i32 = arith.constant 15 : i32
      %45 = arith.andi %44, %c15_i32 : i32
      %c0_i32_39 = arith.constant 0 : i32
      %c0_i32_40 = arith.constant 0 : i32
      %46 = tpu.memref_slice %arg2[%c0_i32_39, %c0_i32_40] : memref<32x32xf32, #tpu.memory_space<any>> -> memref<1x32xf32, #tpu.memory_space<any>>
      %c0_i32_41 = arith.constant 0 : i32
      %47 = tpu.memref_slice %arg12[%44, %c0_i32_41] : memref<128x32xf32, #tpu.memory_space<vmem>> -> memref<1x32xf32, #tpu.memory_space<vmem>>
      %48 = tpu.memref_slice %arg13[%45] : memref<16x!tpu.dma_semaphore, #tpu.memory_space<semaphore_mem>> -> memref<1x!tpu.dma_semaphore, #tpu.memory_space<semaphore_mem>>
      %49 = tpu.memref_squeeze %48 : memref<1x!tpu.dma_semaphore, #tpu.memory_space<semaphore_mem>> -> memref<!tpu.dma_semaphore, #tpu.memory_space<semaphore_mem>>
      tpu.wait_dma2 semaphore(%49 : memref<!tpu.dma_semaphore, #tpu.memory_space<semaphore_mem>>) src(%46 : memref<1x32xf32, #tpu.memory_space<any>>) dst(%47 : memref<1x32xf32, #tpu.memory_space<vmem>>)
    }
    %c128_i32_10 = arith.constant 128 : i32
    %c0 = arith.constant 0 : index
    %c0_11 = arith.constant 0 : index
    %6 = vector.load %arg12[%c0, %c0_11] : memref<128x32xf32, #tpu.memory_space<vmem>>, vector<128x32xf32>
    %c0_12 = arith.constant 0 : index
    %c0_13 = arith.constant 0 : index
    %7 = vector.load %arg3[%c0_12, %c0_13] : memref<1x32xf32, #tpu.memory_space<vmem>>, vector<1x32xf32>
    %8 = vector.broadcast %7 : vector<1x32xf32> to vector<128x32xf32>
    %9 = arith.addf %6, %8 : vector<128x32xf32>
    %cst = arith.constant 0.000000e+00 : f32
    %10 = vector.broadcast %cst : f32 to vector<128x32xf32>
    %11 = arith.maximumf %9, %10 : vector<128x32xf32>
    %12 = vector.shape_cast %11 : vector<128x32xf32> to vector<16x8x32xf32>
    %cst_14 = arith.constant dense<0.000000e+00> : vector<16x32xf32>
    %13 = vector.multi_reduction <add>, %12, %cst_14 [1] : vector<16x8x32xf32> to vector<16x32xf32>
    %cst_15 = arith.constant 1.250000e-01 : f32
    %14 = vector.broadcast %cst_15 : f32 to vector<16x32xf32>
    %15 = arith.mulf %13, %14 : vector<16x32xf32>
    %16 = arith.truncf %15 : vector<16x32xf32> to vector<16x32xbf16>
    %c0_16 = arith.constant 0 : index
    %c0_17 = arith.constant 0 : index
    %17 = vector.load %arg4[%c0_16, %c0_17] : memref<32x64xbf16, #tpu.memory_space<vmem>>, vector<32x64xbf16>
    %cst_18 = arith.constant dense<0.000000e+00> : vector<16x64xf32>
    %18 = tpu.matmul %16, %17, %cst_18 {dimension_numbers = #tpu.dot_dimension_numbers<[1], [0], [0], [1], [0, 0, 1, 1], [], []>} : vector<16x32xbf16>, vector<32x64xbf16>, vector<16x64xf32> -> vector<16x64xf32>
    %c0_19 = arith.constant 0 : index
    %c0_20 = arith.constant 0 : index
    %19 = vector.load %arg5[%c0_19, %c0_20] : memref<1x64xf32, #tpu.memory_space<vmem>>, vector<1x64xf32>
    %20 = vector.broadcast %19 : vector<1x64xf32> to vector<16x64xf32>
    %21 = arith.addf %18, %20 : vector<16x64xf32>
    %22 = vector.extract_strided_slice %21 {offsets = [0, 0], sizes = [8, 64], strides = [1, 1]} : vector<16x64xf32> to vector<8x64xf32>
    %23 = arith.truncf %22 : vector<8x64xf32> to vector<8x64xbf16>
    %24 = vector.extract_strided_slice %21 {offsets = [8, 0], sizes = [8, 64], strides = [1, 1]} : vector<16x64xf32> to vector<8x64xf32>
    %25 = arith.truncf %24 : vector<8x64xf32> to vector<8x64xbf16>
    %c0_21 = arith.constant 0 : index
    %c0_22 = arith.constant 0 : index
    %26 = vector.load %arg6[%c0_21, %c0_22] : memref<64x64xbf16, #tpu.memory_space<vmem>>, vector<64x64xbf16>
    %cst_23 = arith.constant dense<0.000000e+00> : vector<8x64xf32>
    %27 = tpu.matmul %23, %26, %cst_23 {dimension_numbers = #tpu.dot_dimension_numbers<[1], [0], [0], [1], [0, 0, 1, 1], [], []>} : vector<8x64xbf16>, vector<64x64xbf16>, vector<8x64xf32> -> vector<8x64xf32>
    %c0_24 = arith.constant 0 : index
    %c0_25 = arith.constant 0 : index
    %28 = vector.load %arg7[%c0_24, %c0_25] : memref<64x64xbf16, #tpu.memory_space<vmem>>, vector<64x64xbf16>
    %cst_26 = arith.constant dense<0.000000e+00> : vector<8x64xf32>
    %29 = tpu.matmul %25, %28, %cst_26 {dimension_numbers = #tpu.dot_dimension_numbers<[1], [0], [0], [1], [0, 0, 1, 1], [], []>} : vector<8x64xbf16>, vector<64x64xbf16>, vector<8x64xf32> -> vector<8x64xf32>
    %30 = arith.addf %27, %29 : vector<8x64xf32>
    %c0_27 = arith.constant 0 : index
    %c0_28 = arith.constant 0 : index
    %31 = vector.load %arg8[%c0_27, %c0_28] : memref<1x64xf32, #tpu.memory_space<vmem>>, vector<1x64xf32>
    %32 = vector.broadcast %31 : vector<1x64xf32> to vector<8x64xf32>
    %33 = arith.addf %30, %32 : vector<8x64xf32>
    %cst_29 = arith.constant 0.000000e+00 : f32
    %34 = vector.broadcast %cst_29 : f32 to vector<8x64xf32>
    %35 = arith.maximumf %33, %34 : vector<8x64xf32>
    %36 = arith.truncf %35 : vector<8x64xf32> to vector<8x64xbf16>
    %c0_30 = arith.constant 0 : index
    %c0_31 = arith.constant 0 : index
    %37 = vector.load %arg9[%c0_30, %c0_31] : memref<64x128xbf16, #tpu.memory_space<vmem>>, vector<64x128xbf16>
    %cst_32 = arith.constant dense<0.000000e+00> : vector<8x128xf32>
    %38 = tpu.matmul %36, %37, %cst_32 {dimension_numbers = #tpu.dot_dimension_numbers<[1], [0], [0], [1], [0, 0, 1, 1], [], []>} : vector<8x64xbf16>, vector<64x128xbf16>, vector<8x128xf32> -> vector<8x128xf32>
    %c0_33 = arith.constant 0 : index
    %c0_34 = arith.constant 0 : index
    %39 = vector.load %arg10[%c0_33, %c0_34] : memref<1x128xf32, #tpu.memory_space<vmem>>, vector<1x128xf32>
    %40 = vector.broadcast %39 : vector<1x128xf32> to vector<8x128xf32>
    %41 = arith.addf %38, %40 : vector<8x128xf32>
    %c0_35 = arith.constant 0 : index
    %c0_36 = arith.constant 0 : index
    %42 = vector.load %arg11[%c0_35, %c0_36] : memref<8x128xf32, #tpu.memory_space<vmem>>, vector<8x128xf32>
    tpu.vector_store %arg11[%c0_35, %c0_36], %41 {strides = array<i32>} : memref<8x128xf32, #tpu.memory_space<vmem>>, vector<8x128xf32>,
    return
  }
  func.func @transform_1(%arg0: i32, %arg1: memref<128xi32, #tpu.memory_space<smem>>) -> (i32, i32) {
    %c0_i32 = arith.constant 0 : i32
    %c0_i32_0 = arith.constant 0 : i32
    %c0_i32_1 = arith.constant 0 : i32
    return %c0_i32, %c0_i32_0 : i32, i32
  }
  func.func @transform_2(%arg0: i32, %arg1: memref<128xi32, #tpu.memory_space<smem>>) -> (i32, i32) {
    %c0_i32 = arith.constant 0 : i32
    %c0_i32_0 = arith.constant 0 : i32
    %c0_i32_1 = arith.constant 0 : i32
    return %c0_i32, %c0_i32_0 : i32, i32
  }
  func.func @transform_3(%arg0: i32, %arg1: memref<128xi32, #tpu.memory_space<smem>>) -> (i32, i32) {
    %c0_i32 = arith.constant 0 : i32
    %c0_i32_0 = arith.constant 0 : i32
    %c0_i32_1 = arith.constant 0 : i32
    return %c0_i32, %c0_i32_0 : i32, i32
  }
  func.func @transform_4(%arg0: i32, %arg1: memref<128xi32, #tpu.memory_space<smem>>) -> (i32, i32) {
    %c0_i32 = arith.constant 0 : i32
    %c0_i32_0 = arith.constant 0 : i32
    %c0_i32_1 = arith.constant 0 : i32
    return %c0_i32, %c0_i32_0 : i32, i32
  }
  func.func @transform_5(%arg0: i32, %arg1: memref<128xi32, #tpu.memory_space<smem>>) -> (i32, i32) {
    %c0_i32 = arith.constant 0 : i32
    %c0_i32_0 = arith.constant 0 : i32
    %c0_i32_1 = arith.constant 0 : i32
    return %c0_i32, %c0_i32_0 : i32, i32
  }
  func.func @transform_6(%arg0: i32, %arg1: memref<128xi32, #tpu.memory_space<smem>>) -> (i32, i32) {
    %c0_i32 = arith.constant 0 : i32
    %c0_i32_0 = arith.constant 0 : i32
    %c0_i32_1 = arith.constant 0 : i32
    return %c0_i32, %c0_i32_0 : i32, i32
  }
  func.func @transform_7(%arg0: i32, %arg1: memref<128xi32, #tpu.memory_space<smem>>) -> (i32, i32) {
    %c0_i32 = arith.constant 0 : i32
    %c0_i32_0 = arith.constant 0 : i32
    %c0_i32_1 = arith.constant 0 : i32
    return %c0_i32, %c0_i32_0 : i32, i32
  }
  func.func @transform_8(%arg0: i32, %arg1: memref<128xi32, #tpu.memory_space<smem>>) -> (i32, i32) {
    %c0_i32 = arith.constant 0 : i32
    %c0_i32_0 = arith.constant 0 : i32
    %c0_i32_1 = arith.constant 0 : i32
    return %c0_i32, %c0_i32_0 : i32, i32
  }
  func.func @transform_9(%arg0: i32, %arg1: memref<128xi32, #tpu.memory_space<smem>>) -> (i32, i32) {
    %c0_i32 = arith.constant 0 : i32
    %c0_i32_0 = arith.constant 0 : i32
    return %arg0, %c0_i32 : i32, i32
  }
}

</mosaic_0001>

<bundles_post_ra>
// kernel: base_classification_forward.1
= control target key start
LH: loop header
LB: loop body
LE: loop exit
PB: predicated region body
PF: predicated region fallthrough
CT: control target
= control target key end

     0   :  { %s1303_s0 = inlined_call_operand.vmem [shape: s32[128], index: 0, kind: input, shape index: {}]   ;;  %s1304_s1 = inlined_call_operand.vmem [shape: f32[32,32], index: 1, kind: input, shape index: {}]   ;;  %s1305_s2 = inlined_call_operand.vmem [shape: f32[1,32], index: 2, kind: input, shape index: {}]   ;;  %s1306_s3 = inlined_call_operand.vmem [shape: bf16[32,64], index: 3, kind: input, shape index: {}]   ;;  %s1307_s4 = inlined_call_operand.vmem [shape: f32[1,64], index: 4, kind: input, shape index: {}]   ;;  %s1308_s5 = inlined_call_operand.vmem [shape: bf16[64,64], index: 5, kind: input, shape index: {}]   ;;  %s1309_s6 = inlined_call_operand.vmem [shape: bf16[64,64], index: 6, kind: input, shape index: {}]   ;;  %s1310_s7 = inlined_call_operand.vmem [shape: f32[1,64], index: 7, kind: input, shape index: {}]   ;;  %s1311_s8 = inlined_call_operand.vmem [shape: bf16[64,128], index: 8, kind: input, shape index: {}]   ;;  %s1312_s9 = inlined_call_operand.vmem [shape: f32[1,128], index: 9, kind: input, shape index: {}]   ;;  %s1313_s10 = inlined_call_operand.vmem [shape: f32[8,128], index: 10, kind: output, shape index: {}]  }
   0x1   :  { %s15_s15 = sshll.u32 %s1303_s0, 4  ;;  %s16_s15 = int_to_ptr.vmem [resolvable:$true] %s15_s15 }
   0x2   :  { %s1033_s16 = scalar_lea.vmem %s16_s15, 16  ;;  %p1038_p1 = scmp.lt.s32.totalorder %s16_s15, %s16_s15 }
   0x3   :  { %p1034_p0 = scmp.ne.s32.totalorder %s16_s15, %s1033_s16  ;;  %p1039_p2 = scmp.lt.s32.totalorder %s1033_s16, %s1033_s16 }
   0x5   :  { %p1040_p3 = por %p1039_p2, %p1038_p1 }
   0x7   :  { %p1041_p4 = pnand %p1040_p3, %p1034_p0 }
   0x9   :  { %1044 = shalt.err (!%p1041_p4)  }
   0xa   :  { %s1073_s17 = smov [#allocation5]  }
   0xb   :  { %18 = dma.vmem_to_smem %s16_s15, 16, %s1073_s17, [#allocation4] }
   0xc   :  { %1057 = dma.done.wait [#allocation4], 16 }
   0xd   :  { %1058 = vsyncadd [#allocation4], 4294967280 }
   0xe   :  { %20 = sfence }
   0xf   :  { %s1061_s18 = smov 0  }
  0x10 LB: > { %s46_s19 = sld [smem:[#allocation5 + %s1063_s18]]  ;;  %s47_s20 = sand.u32 15, %s1063_s18  ;;  %s1063_s18 = sphi %s1061_s18, %s44_s18  }
  0x11   : > { %s49_s23 = scalar_lea.vmem [#allocation2], %s1063_s18  ;;  %s50_s24 = scalar_lea.sflag [#allocation3], %s47_s20 }
  0x16   : > { %s48_s22 = scalar_lea.vmem %s1304_s1, %s46_s19 }
  0x17   : > { %v68_v0 = vld [vmem:[%s48_s22] sm:$0x1] }
  0x18   : > { %69 = vst [vmem:[%s49_s23] sm:$0x1] %v68_v0 }
  0x19   : > { %94 = vsyncadd %s50_s24, 16  ;;  %s44_s18 = sadd.s32 1, %s1063_s18  }
  0x1a   : > { %p41_p5 = scmp.ge.s32.totalorder %s44_s18, 64  }
  0x1b   :  { %s1065_s25 = smov (%p41_p5), 0  }
  0x1c   :  { %43 = sbr.rel (!%p41_p5) target bundleno = 16 (0x10), region = 175 }
  0x23 LB: > { %s102_s26 = sadd.s32 64, %s1067_s25  ;;  %s852_s12 = scalar_lea.vmem [#allocation2], %s1067_s25  ;;  %s1067_s25 = sphi %s1065_s25, %s101_s25  }
  0x24   : > { %s103_s27 = sld [smem:[#allocation5 + %s102_s26]]  ;;  %s105_s28 = sand.u32 15, %s102_s26 }
  0x25   : > { %s108_s13 = scalar_lea.sflag [#allocation3], %s105_s28 }
  0x2a   : > { %s106_s11 = scalar_lea.vmem %s1304_s1, %s103_s27 }
  0x2b   : > { %v126_v1 = vld [vmem:[%s106_s11] sm:$0x1] }
  0x2c   : > { %891 = vst [vmem:[%s852_s12 + $0x40] sm:$0x1] %v126_v1 }
  0x2d   : > { %152 = vsyncadd %s108_s13, 16  ;;  %s101_s25 = sadd.s32 1, %s1067_s25  }
  0x2e   : > { %p98_p6 = scmp.ge.s32.totalorder %s101_s25, 64  }
  0x2f   :  { %s1069_s14 = smov (%p98_p6), 0  }
  0x30   :  { %100 = sbr.rel (!%p98_p6) target bundleno = 35 (0x23), region = 186 }
  0x37 LB: > { %s159_s15 = sand.u32 15, %s1071_s14  ;;  %s1071_s14 = sphi %s1069_s14, %s158_s14  }
  0x38   : > { %s160_s16 = scalar_lea.sflag [#allocation3], %s159_s15 }
  0x39   : > { %1059 = dma.done.wait %s160_s16, 16 }
  0x3a   : > { %1060 = vsyncadd %s160_s16, 4294967280  ;;  %s158_s14 = sadd.s32 1, %s1071_s14  }
  0x3b   : > { %p155_p7 = scmp.ge.s32.totalorder %s158_s14, 128  }
  0x3c   :  { %v1019_v2 = vld [vmem:[%s1306_s3] sm:$0xff] (%p155_p7)   ;;  %v1074_v3 = vmov (%p155_p7), 0.0   ;;  %v1020_v4 = vld [vmem:[%s1306_s3 + $0x8] sm:$0xff] (%p155_p7)   ;;  %vm1075_vm0 = vmmov (%p155_p7), 0   ;;  %v166_v7 = vld [vmem:[#allocation2 + $0x10] sm:$0xff] (%p155_p7)  ;;  %vm219_vm1 = vcmask (%p155_p7), 261120  }
  0x3d   :  { %157 = sbr.rel (!%p155_p7) target bundleno = 55 (0x37), region = 197  ;;  %948 = vmatprep.subr.bf16.mxu0 (%p155_p7), %v1074_v3  ;;  %956 = vmatprep.subr.bf16.mxu1 (%p155_p7), %v1074_v3  ;;  %v164_v5 = vld [vmem:[#allocation2] sm:$0xff] (%p155_p7)  ;;  %v165_v6 = vld [vmem:[#allocation2 + $0x8] sm:$0xff] (%p155_p7)  ;;  %v167_v8 = vld [vmem:[#allocation2 + $0x18] sm:$0xff] (%p155_p7)  ;;  %vm407_vm2 = vcmask (%p155_p7), 1041409   ;;  %vm409_vm3 = vcmask (%p155_p7), 1042434  }
  0x3e   :  { %949 = vmatpush3.bf16.msra.mxu0 (%p155_p7), %v1019_v2  ;;  %952 = vmatprep.mubr.msk.bf16.mxu0 (%p155_p7), %vm1075_vm0, %v1074_v3  ;;  %v168_v9 = vld [vmem:[#allocation2 + $0x20] sm:$0xff] (%p155_p7)  ;;  %v169_v10 = vld [vmem:[#allocation2 + $0x28] sm:$0xff] (%p155_p7)  ;;  %v170_v11 = vld [vmem:[#allocation2 + $0x30] sm:$0xff] (%p155_p7)  ;;  %vm411_vm4 = vcmask (%p155_p7), 1043459   ;;  %vm413_vm5 = vcmask (%p155_p7), 1044484   ;;  %vm415_vm6 = vcmask (%p155_p7), 1045509  }
  0x3f   :  { %950 = vmatprep.subr.bf16.mxu0 (%p155_p7), %v1074_v3  ;;  %964 = vmatprep.mubr.msk.bf16.mxu1 (%p155_p7), %vm1075_vm0, %v1074_v3  ;;  %v171_v12 = vld [vmem:[#allocation2 + $0x38] sm:$0xff] (%p155_p7)  ;;  %v172_v13 = vld [vmem:[#allocation2 + $0x40] sm:$0xff] (%p155_p7)  ;;  %v173_v14 = vld [vmem:[#allocation2 + $0x48] sm:$0xff] (%p155_p7)  ;;  %vm417_vm7 = vcmask (%p155_p7), 1046534   ;;  %vm419_vm8 = vcmask (%p155_p7), 1047559   ;;  %vm527_vm9 = vcmask (%p155_p7), 523264  }
  0x40   :  { %v174_v15 = vld [vmem:[#allocation2 + $0x50] sm:$0xff] (%p155_p7)  ;;  %v175_v16 = vld [vmem:[#allocation2 + $0x58] sm:$0xff] (%p155_p7)  ;;  %v892_v17 = vld [vmem:[%s1305_s2] ss:$0 sm:$0xff] (%p155_p7) }
  0x41   :  { %v176_v18 = vld [vmem:[#allocation2 + $0x60] sm:$0xff] (%p155_p7)  ;;  %v177_v19 = vld [vmem:[#allocation2 + $0x68] sm:$0xff] (%p155_p7)  ;;  %v178_v20 = vld [vmem:[#allocation2 + $0x70] sm:$0xff] (%p155_p7)  ;;  %v187_v21 = vadd.f32 (%p155_p7), %v892_v17, %v164_v5  ;;  %v188_v22 = vadd.f32 (%p155_p7), %v892_v17, %v165_v6  ;;  %v189_v23 = vadd.f32 (%p155_p7), %v892_v17, %v166_v7  ;;  %v190_v24 = vadd.f32 (%p155_p7), %v892_v17, %v167_v8 }
  0x42   :  { %951 = vmatpush3.bf16.msra.mxu0 (%p155_p7), %v1020_v4  ;;  %v1022_v25 = vld [vmem:[%s1309_s6] sm:$0xff] (%p155_p7)   ;;  %v179_v26 = vld [vmem:[#allocation2 + $0x78] sm:$0xff] (%p155_p7)  ;;  %v191_v27 = vadd.f32 (%p155_p7), %v892_v17, %v168_v9  ;;  %v192_v28 = vadd.f32 (%p155_p7), %v892_v17, %v169_v10  ;;  %v193_v29 = vadd.f32 (%p155_p7), %v892_v17, %v170_v11  ;;  %v194_v30 = vadd.f32 (%p155_p7), %v892_v17, %v171_v12  ;;  %v1024_v35 = vld [vmem:[%s1309_s6 + $0x8] sm:$0xff] (%p155_p7)  }
  0x43   :  { %968 = vmatprep.subr.bf16.mxu0 (%p155_p7), %v1074_v3  ;;  %v1160_v31 = vadd.f32 (%p155_p7), %v892_v17, %v172_v13  ;;  %v1162_v32 = vadd.f32 (%p155_p7), %v892_v17, %v173_v14  ;;  %v1164_v33 = vadd.f32 (%p155_p7), %v892_v17, %v174_v15  ;;  %v1166_v34 = vadd.f32 (%p155_p7), %v892_v17, %v175_v16 }
  0x44   :  { %957 = vmatpush3.bf16.msra.mxu1 %v1022_v25  ;;  %v203_v36 = vmax.f32 %v187_v21, 0.0  ;;  %v204_v37 = vmax.f32 %v188_v22, 0.0  ;;  %v205_v38 = vmax.f32 %v189_v23, 0.0  ;;  %v206_v39 = vmax.f32 %v190_v24, 0.0 }
  0x45   :  { %958 = vmatprep.subr.bf16.mxu1 %v1074_v3  ;;  %v1172_v40 = vadd.f32 %v892_v17, %v176_v18  ;;  %v1174_v41 = vadd.f32 %v892_v17, %v177_v19  ;;  %v1176_v42 = vadd.f32 %v892_v17, %v178_v20  ;;  %v1178_v43 = vadd.f32 %v892_v17, %v179_v26 }
  0x46   :  { %v207_v44 = vmax.f32 %v191_v27, 0.0  ;;  %v208_v45 = vmax.f32 %v192_v28, 0.0  ;;  %v209_v46 = vmax.f32 %v193_v29, 0.0  ;;  %v210_v47 = vmax.f32 %v194_v30, 0.0 }
  0x47   :  { %v211_v48 = vmax.f32 %v1160_v31, 0.0  ;;  %v212_v49 = vmax.f32 %v1162_v32, 0.0  ;;  %v213_v50 = vmax.f32 %v1164_v33, 0.0  ;;  %v214_v51 = vmax.f32 %v1166_v34, 0.0 }
  0x48   :  { %959 = vmatpush3.bf16.msra.mxu1 %v1024_v35  ;;  %v220_v52 = vsel %vm219_vm1, %v203_v36, 0.0  ;;  %v227_v53 = vsel %vm219_vm1, %v204_v37, 0.0  ;;  %v234_v54 = vsel %vm219_vm1, %v205_v38, 0.0  ;;  %v241_v55 = vsel %vm219_vm1, %v206_v39, 0.0 }
  0x49   :  { %960 = vmatprep.subr.bf16.mxu1 %v1074_v3  ;;  %v221_v56 = vrot.slane %v220_v52, 4  ;;  %v228_v57 = vrot.slane %v227_v53, 4  ;;  %v235_v58 = vrot.slane %v234_v54, 4  ;;  %v242_v59 = vrot.slane %v241_v55, 4 }
  0x4a   :  { %v248_v60 = vsel %vm219_vm1, %v207_v44, 0.0  ;;  %v255_v61 = vsel %vm219_vm1, %v208_v45, 0.0  ;;  %v262_v62 = vsel %vm219_vm1, %v209_v46, 0.0  ;;  %v269_v63 = vsel %vm219_vm1, %v210_v47, 0.0 }
  0x4b   :  { %v222_v0 = vadd.f32 %v221_v56, %v220_v52  ;;  %v229_v1 = vadd.f32 %v228_v57, %v227_v53  ;;  %v236_v2 = vadd.f32 %v235_v58, %v234_v54  ;;  %v243_v4 = vadd.f32 %v242_v59, %v241_v55 }
  0x4c   :  { %v249_v5 = vrot.slane %v248_v60, 4  ;;  %v256_v6 = vrot.slane %v255_v61, 4  ;;  %v263_v7 = vrot.slane %v262_v62, 4  ;;  %v270_v8 = vrot.slane %v269_v63, 4 }
  0x4d   :  { %v223_v9 = vrot.slane %v222_v0, 2  ;;  %v230_v10 = vrot.slane %v229_v1, 2  ;;  %v237_v11 = vrot.slane %v236_v2, 2  ;;  %v244_v12 = vrot.slane %v243_v4, 2 }
  0x4e   :  { %v250_v13 = vadd.f32 %v249_v5, %v248_v60  ;;  %v257_v14 = vadd.f32 %v256_v6, %v255_v61  ;;  %v264_v15 = vadd.f32 %v263_v7, %v262_v62  ;;  %v271_v16 = vadd.f32 %v270_v8, %v269_v63 }
  0x4f   :  { %v224_v17 = vadd.f32 %v223_v9, %v222_v0  ;;  %v231_v18 = vadd.f32 %v230_v10, %v229_v1  ;;  %v238_v19 = vadd.f32 %v237_v11, %v236_v2  ;;  %v245_v20 = vadd.f32 %v244_v12, %v243_v4 }
  0x50   :  { %v251_v21 = vrot.slane %v250_v13, 2  ;;  %v258_v22 = vrot.slane %v257_v14, 2  ;;  %v265_v23 = vrot.slane %v264_v15, 2  ;;  %v272_v24 = vrot.slane %v271_v16, 2 }
  0x51   :  { %v225_v25 = vrot.slane %v224_v17, 1  ;;  %v232_v26 = vrot.slane %v231_v18, 1  ;;  %v239_v27 = vrot.slane %v238_v19, 1  ;;  %v246_v28 = vrot.slane %v245_v20, 1 }
  0x52   :  { %v1193_v29 = vadd.f32 %v251_v21, %v250_v13  ;;  %v1195_v30 = vadd.f32 %v258_v22, %v257_v14  ;;  %v1197_v31 = vadd.f32 %v265_v23, %v264_v15  ;;  %v1199_v32 = vadd.f32 %v272_v24, %v271_v16 }
  0x53   :  { %v215_v33 = vmax.f32 %v1172_v40, 0.0  ;;  %v216_v34 = vmax.f32 %v1174_v41, 0.0  ;;  %v217_v35 = vmax.f32 %v1176_v42, 0.0  ;;  %v218_v36 = vmax.f32 %v1178_v43, 0.0 }
  0x54   :  { %v1205_v37 = vadd.f32 %v225_v25, %v224_v17  ;;  %v1207_v38 = vadd.f32 %v232_v26, %v231_v18  ;;  %v1209_v39 = vadd.f32 %v239_v27, %v238_v19  ;;  %v1211_v44 = vadd.f32 %v246_v28, %v245_v20 }
  0x55   :  { %v276_v45 = vsel %vm219_vm1, %v211_v48, 0.0  ;;  %v283_v46 = vsel %vm219_vm1, %v212_v49, 0.0  ;;  %v290_v40 = vsel %vm219_vm1, %v213_v50, 0.0  ;;  %v297_v41 = vsel %vm219_vm1, %v214_v51, 0.0 }
  0x56   :  { %v253_v42 = vrot.slane %v1193_v29, 1  ;;  %v260_v43 = vrot.slane %v1195_v30, 1  ;;  %v267_v47 = vrot.slane %v1197_v31, 1  ;;  %v274_v52 = vrot.slane %v1199_v32, 1 }
  0x57   :  { %v277_v53 = vrot.slane %v276_v45, 4  ;;  %v284_v54 = vrot.slane %v283_v46, 4  ;;  %v291_v55 = vrot.slane %v290_v40, 4  ;;  %v298_v56 = vrot.slane %v297_v41, 4 }
  0x58   :  { %v304_v48 = vsel %vm219_vm1, %v215_v33, 0.0  ;;  %v311_v49 = vsel %vm219_vm1, %v216_v34, 0.0  ;;  %v318_v50 = vsel %vm219_vm1, %v217_v35, 0.0  ;;  %v325_v51 = vsel %vm219_vm1, %v218_v36, 0.0 }
  0x59   :  { %v278_v57 = vadd.f32 %v277_v53, %v276_v45  ;;  %v285_v58 = vadd.f32 %v284_v54, %v283_v46  ;;  %v292_v59 = vadd.f32 %v291_v55, %v290_v40  ;;  %v299_v60 = vadd.f32 %v298_v56, %v297_v41 }
  0x5a   :  { %v305_v61 = vrot.slane %v304_v48, 4  ;;  %v312_v62 = vrot.slane %v311_v49, 4  ;;  %v319_v63 = vrot.slane %v318_v50, 4  ;;  %v326_v0 = vrot.slane %v325_v51, 4 }
  0x5b   :  { %v279_v1 = vrot.slane %v278_v57, 2  ;;  %v286_v2 = vrot.slane %v285_v58, 2  ;;  %v293_v4 = vrot.slane %v292_v59, 2  ;;  %v300_v5 = vrot.slane %v299_v60, 2 }
  0x5c   :  { %v306_v6 = vadd.f32 %v305_v61, %v304_v48  ;;  %v313_v7 = vadd.f32 %v312_v62, %v311_v49  ;;  %v320_v8 = vadd.f32 %v319_v63, %v318_v50  ;;  %v327_v9 = vadd.f32 %v326_v0, %v325_v51 }
  0x5d   :  { %v280_v10 = vadd.f32 %v279_v1, %v278_v57  ;;  %v287_v11 = vadd.f32 %v286_v2, %v285_v58  ;;  %v294_v12 = vadd.f32 %v293_v4, %v292_v59  ;;  %v301_v13 = vadd.f32 %v300_v5, %v299_v60 }
  0x5e   :  { %v307_v14 = vrot.slane %v306_v6, 2  ;;  %v314_v15 = vrot.slane %v313_v7, 2  ;;  %v321_v16 = vrot.slane %v320_v8, 2  ;;  %v328_v17 = vrot.slane %v327_v9, 2 }
  0x5f   :  { %v281_v18 = vrot.slane %v280_v10, 1  ;;  %v288_v19 = vrot.slane %v287_v11, 1  ;;  %v295_v20 = vrot.slane %v294_v12, 1  ;;  %v302_v21 = vrot.slane %v301_v13, 1 }
  0x60   :  { %v308_v22 = vadd.f32 %v307_v14, %v306_v6  ;;  %v315_v23 = vadd.f32 %v314_v15, %v313_v7  ;;  %v322_v24 = vadd.f32 %v321_v16, %v320_v8  ;;  %v329_v25 = vadd.f32 %v328_v17, %v327_v9 }
  0x61   :  { %v282_v26 = vadd.f32 %v281_v18, %v280_v10  ;;  %v289_v27 = vadd.f32 %v288_v19, %v287_v11  ;;  %v296_v28 = vadd.f32 %v295_v20, %v294_v12  ;;  %v303_v33 = vadd.f32 %v302_v21, %v301_v13 }
  0x62   :  { %v309_v34 = vrot.slane %v308_v22, 1  ;;  %v316_v35 = vrot.slane %v315_v23, 1  ;;  %v323_v36 = vrot.slane %v322_v24, 1  ;;  %v330_v45 = vrot.slane %v329_v25, 1 }
  0x63   :  { %v254_v46 = vadd.f32 %v253_v42, %v1193_v29  ;;  %v261_v40 = vadd.f32 %v260_v43, %v1195_v30  ;;  %v268_v41 = vadd.f32 %v267_v47, %v1197_v31  ;;  %v275_v53 = vadd.f32 %v274_v52, %v1199_v32 }
  0x64   :  { %v310_v54 = vadd.f32 %v309_v34, %v308_v22  ;;  %v317_v55 = vadd.f32 %v316_v35, %v315_v23  ;;  %v332_v56 = vmul.f32 0.125, %v1205_v37  ;;  %v333_v48 = vmul.f32 0.125, %v1207_v38 }
  0x65   :  { %v324_v49 = vadd.f32 %v323_v36, %v322_v24  ;;  %v331_v50 = vadd.f32 %v330_v45, %v329_v25  ;;  %v334_v51 = vmul.f32 0.125, %v1209_v39  ;;  %v335_v57 = vmul.f32 0.125, %v1211_v44 }
  0x66   :  { %v340_v29 = vmul.f32 0.125, %v282_v26  ;;  %v341_v42 = vmul.f32 0.125, %v289_v27  ;;  %v342_v30 = vmul.f32 0.125, %v296_v28  ;;  %v343_v43 = vmul.f32 0.125, %v303_v33 }
  0x67   :  { %v336_v31 = vmul.f32 0.125, %v254_v46  ;;  %v337_v32 = vmul.f32 0.125, %v261_v40  ;;  %v338_v47 = vmul.f32 0.125, %v268_v41  ;;  %v344_v52 = vmul.f32 0.125, %v310_v54 }
  0x68   :  { %v339_v37 = vmul.f32 0.125, %v275_v53  ;;  %v345_v58 = vmul.f32 0.125, %v317_v55  ;;  %v348_v38 = vpack.c.bf16 %v332_v56, %v332_v56  ;;  %v349_v59 = vpack.c.bf16 %v333_v48, %v333_v48  ;;  %v1021_v48 = vld [vmem:[%s1308_s5] sm:$0xff]  }
  0x69   :  { %v346_v60 = vmul.f32 0.125, %v324_v49  ;;  %v347_v39 = vmul.f32 0.125, %v331_v50  ;;  %v350_v61 = vpack.c.bf16 %v334_v51, %v334_v51  ;;  %v351_v44 = vpack.c.bf16 %v335_v57, %v335_v57  ;;  %v1023_v50 = vld [vmem:[%s1308_s5 + $0x8] sm:$0xff]   ;;  %v1025_v51 = vld [vmem:[%s1308_s5 + $0x10] sm:$0xff]  }
  0x6a   :  { %v356_v62 = vpack.c.bf16 %v340_v29, %v340_v29  ;;  %v357_v63 = vpack.c.bf16 %v341_v42, %v341_v42  ;;  %v358_v0 = vpack.c.bf16 %v342_v30, %v342_v30  ;;  %v359_v1 = vpack.c.bf16 %v343_v43, %v343_v43  ;;  %v1026_v57 = vld [vmem:[%s1309_s6 + $0x10] sm:$0xff]   ;;  %v1027_v29 = vld [vmem:[%s1308_s5 + $0x18] sm:$0xff]   ;;  %v893_v30 = vld [vmem:[%s1307_s4] ss:$0 sm:$0xff] }
  0x6b   :  { %v352_v2 = vpack.c.bf16 %v336_v31, %v336_v31  ;;  %v353_v4 = vpack.c.bf16 %v337_v32, %v337_v32  ;;  %v354_v5 = vpack.c.bf16 %v338_v47, %v338_v47  ;;  %v360_v6 = vpack.c.bf16 %v344_v52, %v344_v52  ;;  %961 = vmatpush3.bf16.msra.mxu1 %v1026_v57  ;;  %v1028_v42 = vld [vmem:[%s1309_s6 + $0x18] sm:$0xff]  }
  0x6c   :  { %v355_v7 = vpack.c.bf16 %v339_v37, %v339_v37  ;;  %v361_v8 = vpack.c.bf16 %v345_v58, %v345_v58  ;;  %v391_v9 = vunpack.c.l.b16 %v348_v38  ;;  %v392_v10 = vunpack.c.l.b16 %v349_v59  ;;  %962 = vmatprep.subr.bf16.mxu1 %v1074_v3  ;;  %v1029_v38 = vld [vmem:[%s1311_s8] sm:$0xff]  }
  0x6d   :  { %v362_v11 = vpack.c.bf16 %v346_v60, %v346_v60  ;;  %v363_v12 = vpack.c.bf16 %v347_v39, %v347_v39  ;;  %v393_v13 = vunpack.c.l.b16 %v350_v61  ;;  %v394_v14 = vunpack.c.l.b16 %v351_v44  ;;  %v1030_v60 = vld [vmem:[%s1311_s8 + $0x8] sm:$0xff]   ;;  %v1031_v39 = vld [vmem:[%s1311_s8 + $0x10] sm:$0xff]   ;;  %v1032_v61 = vld [vmem:[%s1311_s8 + $0x18] sm:$0xff]  }
  0x6e   :  { %v399_v15 = vunpack.c.l.b16 %v356_v62  ;;  %v400_v16 = vunpack.c.l.b16 %v357_v63  ;;  %v401_v17 = vunpack.c.l.b16 %v358_v0  ;;  %v402_v18 = vunpack.c.l.b16 %v359_v1  ;;  %v907_v0 = vld [vmem:[%s1310_s7] ss:$0 sm:$0xff] }
  0x6f   :  { %v395_v19 = vunpack.c.l.b16 %v352_v2  ;;  %v403_v20 = vunpack.c.l.b16 %v360_v6  ;;  %v396_v21 = vunpack.c.l.b16 %v353_v4  ;;  %v404_v22 = vunpack.c.l.b16 %v361_v8  ;;  %963 = vmatpush3.bf16.msra.mxu1 %v1028_v42 }
  0x70   :  { %v408_v23 = vsel %vm407_vm2, %v392_v10, %v391_v9  ;;  %v421_v24 = vsel %vm407_vm2, %v400_v16, %v399_v15  ;;  %v397_v25 = vunpack.c.l.b16 %v354_v5  ;;  %v405_v26 = vunpack.c.l.b16 %v362_v11  ;;  %980 = vmatprep.subr.bf16.mxu1 %v1074_v3  ;;  %v908_v10 = vld [vmem:[%s1312_s9] ss:$0 sm:$0xff] }
  0x71   :  { %v410_v27 = vsel %vm409_vm3, %v393_v13, %v408_v23  ;;  %v422_v28 = vsel %vm409_vm3, %v401_v17, %v421_v24  ;;  %v398_v33 = vunpack.c.l.b16 %v355_v7  ;;  %v406_v34 = vunpack.c.l.b16 %v363_v12 }
  0x72   :  { %v412_v35 = vsel %vm411_vm4, %v394_v14, %v410_v27  ;;  %v423_v36 = vsel %vm411_vm4, %v402_v18, %v422_v28 }
  0x73   :  { %v414_v45 = vsel %vm413_vm5, %v395_v19, %v412_v35  ;;  %v424_v46 = vsel %vm413_vm5, %v403_v20, %v423_v36 }
  0x74   :  { %v416_v40 = vsel %vm415_vm6, %v396_v21, %v414_v45  ;;  %v425_v41 = vsel %vm415_vm6, %v404_v22, %v424_v46 }
  0x75   :  { %v418_v53 = vsel %vm417_vm7, %v397_v25, %v416_v40  ;;  %v426_v54 = vsel %vm417_vm7, %v405_v26, %v425_v41 }
  0x76   :  { %v420_v55 = vsel %vm419_vm8, %v398_v33, %v418_v53  ;;  %v427_v56 = vsel %vm419_vm8, %v406_v34, %v426_v54 }
  0x77   :  { %v428_v49 = vpack.c.b16 %v427_v56, %v420_v55 }
  0x79   :  { %953 = vmatmul.mubr.msk.bf16.vlgmr.msra.gmra.mrb[0].mxu0 %vm219_vm1, %v428_v49 }
  0x7a   :  { %969 = vmatpush3.bf16.msra.mxu0 %v1021_v48  ;;  %976 = vmatprep.mubr.msk.bf16.mxu0 %vm1075_vm0, %v1074_v3 }
  0x7b   :  { %970 = vmatprep.subr.bf16.mxu0 %v1074_v3 }
  0x7e   :  { %971 = vmatpush3.bf16.msra.mxu0 %v1023_v50 }
  0x7f   :  { %972 = vmatprep.subr.bf16.mxu0 %v1074_v3 }
  0x82   :  { %973 = vmatpush3.bf16.msra.mxu0 %v1025_v51 }
  0x83   :  { %974 = vmatprep.subr.bf16.mxu0 %v1074_v3 }
  0x86   :  { %975 = vmatpush3.bf16.msra.mxu0 %v1027_v29 }
 0x14c   :  { %v478_v43 = vpop.f32.mrb[0].mxu0 }
 0x14d   :  { %v479_v31 = vadd.f32 %v893_v30, %v478_v43  ;;  %v954_v32 = vpop.f32.mrb[1].mxu0 }
 0x14e   :  { %v481_v47 = vpop.f32.mrb[2].mxu0 }
 0x14f   :  { %v485_v52 = vpack.c.bf16 %v479_v31, %v479_v31  ;;  %v482_v37 = vadd.f32 %v893_v30, %v481_v47  ;;  %v955_v58 = vpop.f32.mrb[3].mxu0 }
 0x151   :  { %v486_v59 = vpack.c.bf16 %v482_v37, %v482_v37  ;;  %977 = vmatmul.mubr.msk.bf16.vlgmr.msra.gmra.mrb[4].mxu0 %vm527_vm9, %v485_v52 }
 0x153   :  { %965 = vmatmul.mubr.msk.bf16.vlgmr.msra.gmra.mrb[0].mxu1 %vm527_vm9, %v486_v59 }
 0x154   :  { %981 = vmatpush3.bf16.msra.mxu1 %v1029_v38  ;;  %988 = vmatprep.mubr.msk.bf16.mxu1 %vm1075_vm0, %v1074_v3 }
 0x155   :  { %982 = vmatprep.subr.bf16.mxu1 %v1074_v3 }
 0x158   :  { %983 = vmatpush3.bf16.msra.mxu1 %v1030_v60 }
 0x159   :  { %984 = vmatprep.subr.bf16.mxu1 %v1074_v3 }
 0x15c   :  { %985 = vmatpush3.bf16.msra.mxu1 %v1031_v39 }
 0x15d   :  { %986 = vmatprep.subr.bf16.mxu1 %v1074_v3 }
 0x160   :  { %987 = vmatpush3.bf16.msra.mxu1 %v1032_v61 }
 0x224   :  { %v632_v44 = vpop.f32.mrb[4].mxu0 }
 0x225   :  { %v978_v62 = vpop.f32.mrb[5].mxu0 }
 0x226   :  { %v565_v63 = vpop.f32.mrb[0].mxu1  ;;  %v635_v1 = vpop.f32.mrb[6].mxu0 }
 0x227   :  { %v633_v2 = vadd.f32 %v632_v44, %v565_v63  ;;  %v966_v4 = vpop.f32.mrb[1].mxu1  ;;  %v979_v5 = vpop.f32.mrb[7].mxu0 }
 0x228   :  { %v568_v6 = vpop.f32.mrb[2].mxu1 }
 0x229   :  { %v645_v7 = vadd.f32 %v907_v0, %v633_v2  ;;  %v967_v8 = vpop.f32.mrb[3].mxu1 }
 0x22b   :  { %v646_v3 = vmax.f32 %v645_v7, 0.0 }
 0x22d   :  { %v647_v9 = vpack.c.bf16 %v646_v3, %v646_v3 }
 0x22f   :  { %989 = vmatmul.mubr.msk.bf16.vlgmr.msra.gmra.mrb[4].mxu1 %vm527_vm9, %v647_v9 }
 0x302   :  { %v724_v11 = vpop.f32.mrb[4].mxu1 }
 0x303   :  { %v725_v12 = vadd.f32 %v908_v10, %v724_v11  ;;  %v990_v13 = vpop.f32.mrb[5].mxu1 }
 0x304   :  { %v727_v14 = vpop.f32.mrb[6].mxu1 }
 0x305   :  { %730 = vst [vmem:[%s1313_s10] sm:$0xff] %v725_v12  ;;  %v991_v15 = vpop.f32.mrb[7].mxu1 }
 0x306   :  { %735 = vsyncmov [#allocation3] }
 0x309   :  { %s736_s22 = vpop.sfrf %735 }
 0x30a   :  { %p914_p8 = scmp.ne.s32.totalorder %s736_s22, 0 }
 0x30c   :  { %740 = shalt.err (%p914_p8)  }
 0x30d   :  { %742 = vsyncmov [#allocation3 + $0x1] }
 0x310   :  { %s743_s23 = vpop.sfrf %742 }
 0x311   :  { %p915_p9 = scmp.ne.s32.totalorder %s743_s23, 0 }
 0x313   :  { %747 = shalt.err (%p915_p9)  }
 0x314   :  { %749 = vsyncmov [#allocation3 + $0x2] }
 0x317   :  { %s750_s24 = vpop.sfrf %749 }
 0x318   :  { %p916_p10 = scmp.ne.s32.totalorder %s750_s24, 0 }
 0x31a   :  { %754 = shalt.err (%p916_p10)  }
 0x31b   :  { %756 = vsyncmov [#allocation3 + $0x3] }
 0x31e   :  { %s757_s9 = vpop.sfrf %756 }
 0x31f   :  { %p917_p11 = scmp.ne.s32.totalorder %s757_s9, 0 }
 0x321   :  { %761 = shalt.err (%p917_p11)  }
 0x322   :  { %763 = vsyncmov [#allocation3 + $0x4] }
 0x325   :  { %s764_s25 = vpop.sfrf %763 }
 0x326   :  { %p918_p12 = scmp.ne.s32.totalorder %s764_s25, 0 }
 0x328   :  { %768 = shalt.err (%p918_p12)  }
 0x329   :  { %770 = vsyncmov [#allocation3 + $0x5] }
 0x32c   :  { %s771_s10 = vpop.sfrf %770 }
 0x32d   :  { %p919_p13 = scmp.ne.s32.totalorder %s771_s10, 0 }
 0x32f   :  { %775 = shalt.err (%p919_p13)  }
 0x330   :  { %777 = vsyncmov [#allocation3 + $0x6] }
 0x333   :  { %s778_s26 = vpop.sfrf %777 }
 0x334   :  { %p920_p0 = scmp.ne.s32.totalorder %s778_s26, 0 }
 0x336   :  { %782 = shalt.err (%p920_p0)  }
 0x337   :  { %784 = vsyncmov [#allocation3 + $0x7] }
 0x33a   :  { %s785_s27 = vpop.sfrf %784 }
 0x33b   :  { %p921_p1 = scmp.ne.s32.totalorder %s785_s27, 0 }
 0x33d   :  { %789 = shalt.err (%p921_p1)  }
 0x33e   :  { %791 = vsyncmov [#allocation3 + $0x8] }
 0x341   :  { %s792_s28 = vpop.sfrf %791 }
 0x342   :  { %p922_p2 = scmp.ne.s32.totalorder %s792_s28, 0 }
 0x344   :  { %796 = shalt.err (%p922_p2)  }
 0x345   :  { %798 = vsyncmov [#allocation3 + $0x9] }
 0x348   :  { %s799_s29 = vpop.sfrf %798 }
 0x349   :  { %p923_p3 = scmp.ne.s32.totalorder %s799_s29, 0 }
 0x34b   :  { %803 = shalt.err (%p923_p3)  }
 0x34c   :  { %805 = vsyncmov [#allocation3 + $0xa] }
 0x34f   :  { %s806_s30 = vpop.sfrf %805 }
 0x350   :  { %p924_p4 = scmp.ne.s32.totalorder %s806_s30, 0 }
 0x352   :  { %810 = shalt.err (%p924_p4)  }
 0x353   :  { %812 = vsyncmov [#allocation3 + $0xb] }
 0x356   :  { %s813_s11 = vpop.sfrf %812 }
 0x357   :  { %p925_p5 = scmp.ne.s32.totalorder %s813_s11, 0 }
 0x359   :  { %817 = shalt.err (%p925_p5)  }
 0x35a   :  { %819 = vsyncmov [#allocation3 + $0xc] }
 0x35d   :  { %s820_s12 = vpop.sfrf %819 }
 0x35e   :  { %p926_p6 = scmp.ne.s32.totalorder %s820_s12, 0 }
 0x360   :  { %824 = shalt.err (%p926_p6)  }
 0x361   :  { %826 = vsyncmov [#allocation3 + $0xd] }
 0x364   :  { %s827_s13 = vpop.sfrf %826 }
 0x365   :  { %p927_p7 = scmp.ne.s32.totalorder %s827_s13, 0 }
 0x367   :  { %831 = shalt.err (%p927_p7)  }
 0x368   :  { %833 = vsyncmov [#allocation3 + $0xe] }
 0x36b   :  { %s834_s14 = vpop.sfrf %833 }
 0x36c   :  { %p928_p8 = scmp.ne.s32.totalorder %s834_s14, 0 }
 0x36e   :  { %838 = shalt.err (%p928_p8)  }
 0x36f   :  { %840 = vsyncmov [#allocation3 + $0xf] }
 0x372   :  { %s841_s15 = vpop.sfrf %840 }
 0x373   :  { %p929_p9 = scmp.ne.s32.totalorder %s841_s15, 0 }
 0x375   :  { %845 = shalt.err (%p929_p9)  }

</bundles_post_ra>
